<compile_context>
chip_gen: v7x
topology: tpu7x:2x2x1
jax: 0.10.0
libtpu: 0.0.40
codegen_flags: <defaults>
</compile_context>

<pallas_src>
import jax
import jax.numpy as jnp
from jax.experimental import pallas as pl
from jax.experimental.pallas import tpu as pltpu


_LANE_DENSE = 1024       # lane width: large multiple of 128 -> unmasked stores
_MAX_TILE_ROWS = 1024    # 1024 x 1024 f32 = 4 MiB/tile; x4 buffers fits v7x VMEM


def _identity_copy_kernel(x_ref, o_ref):
    # Pure elementwise passthrough on the current VMEM tile.
    o_ref[...] = x_ref[...]


@jax.jit
def resnet_stub_forward(x: jax.Array) -> jax.Array:
    """Pallas 'forward' for the stub ResNet module.

    The PyTorch forward performs no computation; this streams the input
    through VMEM in large lane-dense tiles and writes it back unchanged,
    aliasing the output onto the input slab.
    """
    orig_shape = x.shape
    total = x.size

    # Lane-dense flattening: last dim a large multiple of 128 when possible.
    lane = _LANE_DENSE if total >= _LANE_DENSE else 128
    rows = pl.cdiv(total, lane)

    if rows <= _MAX_TILE_ROWS:
        # Single block: sublane dim equals the full array dim (exempt from the
        # divisible-by-8 rule), lane dim is a multiple of 128.
        tile_rows = rows
    else:
        # Fixed large tile (divisible by 8); pad rows up to a tile multiple so
        # every grid step is a full, equal-sized block.
        tile_rows = _MAX_TILE_ROWS
        rows = pl.cdiv(rows, tile_rows) * tile_rows

    padded_total = rows * lane
    flat = x.reshape(-1)
    if padded_total != total:
        flat = jnp.pad(flat, (0, padded_total - total))
    x2d = flat.reshape(rows, lane)

    grid = (rows // tile_rows,)

    out2d = pl.pallas_call(
        _identity_copy_kernel,
        out_shape=jax.ShapeDtypeStruct((rows, lane), x.dtype),
        grid_spec=pltpu.PrefetchScalarGridSpec(
            num_scalar_prefetch=0,
            grid=grid,
            in_specs=[pl.BlockSpec((tile_rows, lane), lambda i: (i, 0))],
            out_specs=pl.BlockSpec((tile_rows, lane), lambda i: (i, 0)),
        ),
        input_output_aliases={0: 0},
        compiler_params=pltpu.CompilerParams(
            dimension_semantics=("parallel",),
            vmem_limit_bytes=32 * 1024 * 1024,
        ),
    )(x2d)

    out_flat = out2d.reshape(-1)
    if padded_total != total:
        out_flat = out_flat[:total]
    return out_flat.reshape(orig_shape)


if __name__ == "__main__":
    key = jax.random.PRNGKey(0)
    # Small NCHW input consistent with a conv-net style forward.
    x = jax.random.normal(key, (2, 4, 16, 16), dtype=jnp.float32)

    y = resnet_stub_forward(x)
    jax.block_until_ready(y)

    # Sanity check: identity semantics (the only well-defined part of the stub).
    assert y.shape == x.shape
    assert bool(jnp.allclose(y, x))

    print("KERNEL_OK")
</pallas_src>

<mosaic_0001>
module attributes {stable_mosaic.version = 11 : i64} {
  func.func @_identity_copy_kernel(%arg0: i32, %arg1: memref<2x1024xf32, #tpu.memory_space<vmem>>, %arg2: memref<2x1024xf32, #tpu.memory_space<vmem>>) attributes {dimension_semantics = [#tpu.dimension_semantics<parallel>], iteration_bounds = array<i64: 1>, scalar_prefetch = 0 : i64, scratch_operands = 0 : i64, tpu.core_type = #tpu.core_type<tc>, window_params = [{transform_indices = @transform_0, window_bounds = array<i64: 2, 1024>}, {transform_indices = @transform_1, window_bounds = array<i64: 2, 1024>}]} {
    %c0 = arith.constant 0 : index
    %c0_0 = arith.constant 0 : index
    %0 = vector.load %arg1[%c0, %c0_0] : memref<2x1024xf32, #tpu.memory_space<vmem>>, vector<2x1024xf32>
    %c0_1 = arith.constant 0 : index
    %c0_2 = arith.constant 0 : index
    %1 = vector.load %arg2[%c0_1, %c0_2] : memref<2x1024xf32, #tpu.memory_space<vmem>>, vector<2x1024xf32>
    tpu.vector_store %arg2[%c0_1, %c0_2], %0 {strides = array<i32>} : memref<2x1024xf32, #tpu.memory_space<vmem>>, vector<2x1024xf32>,
    return
  }
  func.func @transform_0(%arg0: i32) -> (i32, i32) {
    %c0_i32 = arith.constant 0 : i32
    %c0_i32_0 = arith.constant 0 : i32
    return %arg0, %c0_i32 : i32, i32
  }
  func.func @transform_1(%arg0: i32) -> (i32, i32) {
    %c0_i32 = arith.constant 0 : i32
    %c0_i32_0 = arith.constant 0 : i32
    return %arg0, %c0_i32 : i32, i32
  }
}

</mosaic_0001>

<bundles_post_ra>
// kernel: resnet_stub_forward.1
= control target key start
LH: loop header
LB: loop body
LE: loop exit
PB: predicated region body
PF: predicated region fallthrough
CT: control target
= control target key end

     0   :  { %s38_s0 = inlined_call_operand.vmem [shape: f32[2,1024], index: 0, kind: input, shape index: {}, may-alias: {0,1}]   ;;  %s39_s1 = inlined_call_operand.vmem [shape: f32[2,1024], index: 1, kind: output, shape index: {}, may-alias: {0,1}]  }
   0x1   :  { %v8_v0 = vld [vmem:[%s38_s0] sm:$0xff]  ;;  %v9_v1 = vld [vmem:[%s38_s0 + $0x8] sm:$0xff] }
   0x2   :  { %10 = vst [vmem:[%s39_s1] sm:$0xff] %v8_v0  ;;  %11 = vst [vmem:[%s39_s1 + $0x8] sm:$0xff] %v9_v1 }

</bundles_post_ra>
